<compile_context>
chip_gen: v6e
topology: v6e:2x2x1
jax: 0.10.0
libtpu: 0.0.40
codegen_flags: <defaults>
</compile_context>

<pallas_src>
import functools

import jax
import jax.numpy as jnp
from jax.experimental import pallas as pl
from jax.experimental.pallas import tpu as pltpu


def _erf_f32(x):
    """Abramowitz & Stegun 7.1.26 erf approximation, |err| <= 1.5e-7.

    Built only from ops guaranteed to lower in Mosaic (exp, mul/add, div, where),
    so the kernel matches PyTorch's exact-erf F.gelu to well below f32 tolerance.
    """
    a1, a2, a3, a4, a5 = (0.254829592, -0.284496736, 1.421413741,
                          -1.453152027, 1.061405429)
    p = 0.3275911
    sgn = jnp.where(x >= 0.0, 1.0, -1.0)
    ax = jnp.abs(x)
    t = 1.0 / (1.0 + p * ax)
    poly = ((((a5 * t + a4) * t + a3) * t + a2) * t + a1) * t
    return sgn * (1.0 - poly * jnp.exp(-ax * ax))


def _gelu_exact(x):
    # torch.nn.functional.gelu default (erf form): 0.5*x*(1+erf(x/sqrt(2)))
    return 0.5 * x * (1.0 + _erf_f32(x * 0.7071067811865476))


def _ffn_kernel(x_ref, w1_ref, b1_ref, w2_ref, b2_ref, o_ref):
    # x_ref block: (1, C_in, tn); weights are fully resident small blocks.
    x = x_ref[0].astype(jnp.float32)            # (C_in, tn)
    w1 = w1_ref[...].astype(jnp.float32)        # (C_hid, C_in)
    b1 = b1_ref[...].astype(jnp.float32)        # (C_hid, 1)
    w2 = w2_ref[...].astype(jnp.float32)        # (C_out, C_hid)
    b2 = b2_ref[...].astype(jnp.float32)        # (C_out, 1)

    # fc1 (1x1 conv == channel matmul), f32 accumulation on the MXU.
    h = jnp.dot(w1, x, preferred_element_type=jnp.float32) + b1   # (C_hid, tn)
    h = _gelu_exact(h)
    # dropout p=0.0 -> identity.
    z = jnp.dot(w2, h, preferred_element_type=jnp.float32) + b2   # (C_out, tn)
    o_ref[0] = z.astype(o_ref.dtype)


def _pick_spatial_tile(n, c_in, c_hid, c_out, itemsize, target_bytes=2 << 20):
    """Largest tn (multiple of 128, dividing n) whose per-step slab fits the target."""
    if n % 128 != 0:
        return n  # full-extent block satisfies the (8,128) rule via "equal full dim"
    best = 128
    tn = 128
    while tn <= n:
        if n % tn == 0:
            per_step = ((c_in + c_out) * tn * itemsize          # HBM-facing blocks
                        + (c_in + c_hid + c_out) * tn * 4)       # f32 temporaries
            if per_step <= target_bytes:
                best = tn
        tn += 128
    return best


def ffn(x, w1, b1, w2, b2):
    """x: (B, C_in, H, W); w1: (C_hid, C_in, 1, 1); b1: (C_hid,);
    w2: (C_out, C_hid, 1, 1); b2: (C_out,). Returns (B, C_out, H, W)."""
    B, C_in, H, W = x.shape
    N = H * W
    C_hid = w1.shape[0]
    C_out = w2.shape[0]

    x3 = x.reshape(B, C_in, N)
    w1_2 = w1.reshape(C_hid, C_in)
    w2_2 = w2.reshape(C_out, C_hid)
    b1_2 = b1.reshape(C_hid, 1)
    b2_2 = b2.reshape(C_out, 1)

    itemsize = jnp.dtype(x.dtype).itemsize
    tn = _pick_spatial_tile(N, C_in, C_hid, C_out, itemsize)
    grid = (B, N // tn)

    # Explicit VMEM budget: double-buffered in/out blocks + resident weights +
    # f32 temporaries, clamped to stay comfortably inside v7x's 64 MiB per-TC VMEM.
    in_blk = C_in * tn * itemsize
    out_blk = C_out * tn * itemsize
    w_bytes = (C_hid * C_in + C_out * C_hid + C_hid + C_out) * itemsize
    f32_tmp = (C_in + C_hid + C_out) * tn * 4
    need = 2 * (in_blk + out_blk) + 2 * w_bytes + 3 * f32_tmp
    vmem_limit = int(min(max(2 * need, 32 * 1024 * 1024), 56 * 1024 * 1024))

    out3 = pl.pallas_call(
        _ffn_kernel,
        out_shape=jax.ShapeDtypeStruct((B, C_out, N), x.dtype),
        grid_spec=pltpu.PrefetchScalarGridSpec(
            num_scalar_prefetch=0,
            grid=grid,
            in_specs=[
                pl.BlockSpec((1, C_in, tn), lambda b, j: (b, 0, j)),   # x slab
                pl.BlockSpec((C_hid, C_in), lambda b, j: (0, 0)),      # w1 (resident)
                pl.BlockSpec((C_hid, 1), lambda b, j: (0, 0)),         # b1
                pl.BlockSpec((C_out, C_hid), lambda b, j: (0, 0)),     # w2 (resident)
                pl.BlockSpec((C_out, 1), lambda b, j: (0, 0)),         # b2
            ],
            out_specs=pl.BlockSpec((1, C_out, tn), lambda b, j: (b, 0, j)),
        ),
        compiler_params=pltpu.CompilerParams(
            dimension_semantics=("parallel", "parallel"),
            vmem_limit_bytes=vmem_limit,
        ),
    )(x3, w1_2, b1_2, w2_2, b2_2)

    return out3.reshape(B, C_out, H, W)


def ffn_ref(x, w1, b1, w2, b2):
    """Pure-JAX reference mirroring the PyTorch forward (exact-erf GELU)."""
    B, C_in, H, W = x.shape
    xf = x.reshape(B, C_in, H * W).astype(jnp.float32)
    w1_2 = w1.reshape(w1.shape[0], C_in).astype(jnp.float32)
    w2_2 = w2.reshape(w2.shape[0], w1.shape[0]).astype(jnp.float32)
    h = jnp.einsum("oc,bcn->bon", w1_2, xf) + b1.astype(jnp.float32).reshape(1, -1, 1)
    h = jax.nn.gelu(h, approximate=False)          # == F.gelu default (erf form)
    z = jnp.einsum("oh,bhn->bon", w2_2, h) + b2.astype(jnp.float32).reshape(1, -1, 1)
    return z.reshape(B, -1, H, W).astype(x.dtype)


if __name__ == "__main__":
    # Small shapes consistent with the module: batch=2, channels=4, 16x16 spatial,
    # hidden=32, out_features defaulting to in_features (required by the final reshape).
    B, C, H, W = 2, 4, 16, 16
    HID = 32

    key = jax.random.PRNGKey(0)
    kx, k1, k2, k3, k4 = jax.random.split(key, 5)
    x = jax.random.normal(kx, (B, C, H, W), dtype=jnp.float32)
    w1 = jax.random.normal(k1, (HID, C, 1, 1), dtype=jnp.float32) * 0.2
    b1 = jax.random.normal(k2, (HID,), dtype=jnp.float32) * 0.1
    w2 = jax.random.normal(k3, (C, HID, 1, 1), dtype=jnp.float32) * 0.2
    b2 = jax.random.normal(k4, (C,), dtype=jnp.float32) * 0.1

    out = ffn(x, w1, b1, w2, b2)
    out = jax.block_until_ready(out)

    ref = ffn_ref(x, w1, b1, w2, b2)
    assert out.shape == (B, C, H, W)
    assert jnp.allclose(out, ref, atol=1e-4, rtol=1e-4), "mismatch vs reference"
    print("KERNEL_OK")
</pallas_src>

<mosaic_0001>
module attributes {stable_mosaic.version = 11 : i64} {
  func.func @_ffn_kernel(%arg0: i32, %arg1: i32, %arg2: memref<1x4x256xf32, #tpu.memory_space<vmem>>, %arg3: memref<32x4xf32, #tpu.memory_space<vmem>>, %arg4: memref<32x1xf32, #tpu.memory_space<vmem>>, %arg5: memref<4x32xf32, #tpu.memory_space<vmem>>, %arg6: memref<4x1xf32, #tpu.memory_space<vmem>>, %arg7: memref<1x4x256xf32, #tpu.memory_space<vmem>>) attributes {dimension_semantics = [#tpu.dimension_semantics<parallel>, #tpu.dimension_semantics<parallel>], iteration_bounds = array<i64: 2, 1>, scalar_prefetch = 0 : i64, scratch_operands = 0 : i64, tpu.core_type = #tpu.core_type<tc>, window_params = [{transform_indices = @transform_0, window_bounds = array<i64: 1, 4, 256>}, {pipeline_mode = #tpu.pipeline_mode<synchronous>, transform_indices = @transform_1, window_bounds = array<i64: 32, 4>}, {pipeline_mode = #tpu.pipeline_mode<synchronous>, transform_indices = @transform_2, window_bounds = array<i64: 32, 1>}, {pipeline_mode = #tpu.pipeline_mode<synchronous>, transform_indices = @transform_3, window_bounds = array<i64: 4, 32>}, {pipeline_mode = #tpu.pipeline_mode<synchronous>, transform_indices = @transform_4, window_bounds = array<i64: 4, 1>}, {transform_indices = @transform_5, window_bounds = array<i64: 1, 4, 256>}]} {
    %c0 = arith.constant 0 : index
    %c0_0 = arith.constant 0 : index
    %c0_1 = arith.constant 0 : index
    %0 = vector.load %arg2[%c0, %c0_0, %c0_1] : memref<1x4x256xf32, #tpu.memory_space<vmem>>, vector<1x4x256xf32>
    %1 = vector.shape_cast %0 : vector<1x4x256xf32> to vector<4x256xf32>
    %c0_2 = arith.constant 0 : index
    %c0_3 = arith.constant 0 : index
    %2 = vector.load %arg3[%c0_2, %c0_3] : memref<32x4xf32, #tpu.memory_space<vmem>>, vector<32x4xf32>
    %c0_4 = arith.constant 0 : index
    %c0_5 = arith.constant 0 : index
    %3 = vector.load %arg4[%c0_4, %c0_5] : memref<32x1xf32, #tpu.memory_space<vmem>>, vector<32x1xf32>
    %c0_6 = arith.constant 0 : index
    %c0_7 = arith.constant 0 : index
    %4 = vector.load %arg5[%c0_6, %c0_7] : memref<4x32xf32, #tpu.memory_space<vmem>>, vector<4x32xf32>
    %c0_8 = arith.constant 0 : index
    %c0_9 = arith.constant 0 : index
    %5 = vector.load %arg6[%c0_8, %c0_9] : memref<4x1xf32, #tpu.memory_space<vmem>>, vector<4x1xf32>
    %cst = arith.constant dense<0.000000e+00> : vector<32x256xf32>
    %6 = tpu.matmul %2, %1, %cst {dimension_numbers = #tpu.dot_dimension_numbers<[1], [0], [0], [1], [0, 0, 1, 1], [], []>} : vector<32x4xf32>, vector<4x256xf32>, vector<32x256xf32> -> vector<32x256xf32>
    %7 = vector.broadcast %3 : vector<32x1xf32> to vector<32x256xf32>
    %8 = arith.addf %6, %7 : vector<32x256xf32>
    %cst_10 = arith.constant 5.000000e-01 : f32
    %9 = vector.broadcast %cst_10 : f32 to vector<32x256xf32>
    %10 = arith.mulf %9, %8 : vector<32x256xf32>
    %cst_11 = arith.constant 0.707106769 : f32
    %11 = vector.broadcast %cst_11 : f32 to vector<32x256xf32>
    %12 = arith.mulf %8, %11 : vector<32x256xf32>
    %cst_12 = arith.constant 0.000000e+00 : f32
    %13 = vector.broadcast %cst_12 : f32 to vector<32x256xf32>
    %14 = arith.cmpf oge, %12, %13 : vector<32x256xf32>
    %cst_13 = arith.constant 1.000000e+00 : f32
    %cst_14 = arith.constant -1.000000e+00 : f32
    %15 = vector.broadcast %cst_13 : f32 to vector<32x256xf32>
    %16 = vector.broadcast %cst_14 : f32 to vector<32x256xf32>
    %17 = arith.select %14, %15, %16 : vector<32x256xi1>, vector<32x256xf32>
    %18 = math.absf %12 : vector<32x256xf32>
    %cst_15 = arith.constant 0.327591091 : f32
    %19 = vector.broadcast %cst_15 : f32 to vector<32x256xf32>
    %20 = arith.mulf %19, %18 : vector<32x256xf32>
    %cst_16 = arith.constant 1.000000e+00 : f32
    %21 = vector.broadcast %cst_16 : f32 to vector<32x256xf32>
    %22 = arith.addf %21, %20 : vector<32x256xf32>
    %cst_17 = arith.constant 1.000000e+00 : f32
    %23 = vector.broadcast %cst_17 : f32 to vector<32x256xf32>
    %24 = arith.divf %23, %22 : vector<32x256xf32>
    %cst_18 = arith.constant 1.06140542 : f32
    %25 = vector.broadcast %cst_18 : f32 to vector<32x256xf32>
    %26 = arith.mulf %25, %24 : vector<32x256xf32>
    %cst_19 = arith.constant -1.45315206 : f32
    %27 = vector.broadcast %cst_19 : f32 to vector<32x256xf32>
    %28 = arith.addf %26, %27 : vector<32x256xf32>
    %29 = arith.mulf %28, %24 : vector<32x256xf32>
    %cst_20 = arith.constant 1.42141378 : f32
    %30 = vector.broadcast %cst_20 : f32 to vector<32x256xf32>
    %31 = arith.addf %29, %30 : vector<32x256xf32>
    %32 = arith.mulf %31, %24 : vector<32x256xf32>
    %cst_21 = arith.constant -0.284496725 : f32
    %33 = vector.broadcast %cst_21 : f32 to vector<32x256xf32>
    %34 = arith.addf %32, %33 : vector<32x256xf32>
    %35 = arith.mulf %34, %24 : vector<32x256xf32>
    %cst_22 = arith.constant 0.254829586 : f32
    %36 = vector.broadcast %cst_22 : f32 to vector<32x256xf32>
    %37 = arith.addf %35, %36 : vector<32x256xf32>
    %38 = arith.mulf %37, %24 : vector<32x256xf32>
    %cst_23 = arith.constant 0.000000e+00 : f32
    %39 = vector.broadcast %cst_23 : f32 to vector<32x256xf32>
    %40 = arith.subf %39, %18 : vector<32x256xf32>
    %41 = arith.mulf %40, %18 : vector<32x256xf32>
    %42 = math.exp %41 : vector<32x256xf32>
    %43 = arith.mulf %38, %42 : vector<32x256xf32>
    %cst_24 = arith.constant 1.000000e+00 : f32
    %44 = vector.broadcast %cst_24 : f32 to vector<32x256xf32>
    %45 = arith.subf %44, %43 : vector<32x256xf32>
    %46 = arith.mulf %17, %45 : vector<32x256xf32>
    %cst_25 = arith.constant 1.000000e+00 : f32
    %47 = vector.broadcast %cst_25 : f32 to vector<32x256xf32>
    %48 = arith.addf %47, %46 : vector<32x256xf32>
    %49 = arith.mulf %10, %48 : vector<32x256xf32>
    %cst_26 = arith.constant dense<0.000000e+00> : vector<4x256xf32>
    %50 = tpu.matmul %4, %49, %cst_26 {dimension_numbers = #tpu.dot_dimension_numbers<[1], [0], [0], [1], [0, 0, 1, 1], [], []>} : vector<4x32xf32>, vector<32x256xf32>, vector<4x256xf32> -> vector<4x256xf32>
    %51 = vector.broadcast %5 : vector<4x1xf32> to vector<4x256xf32>
    %52 = arith.addf %50, %51 : vector<4x256xf32>
    %c0_27 = arith.constant 0 : index
    %c0_28 = arith.constant 0 : index
    %c0_29 = arith.constant 0 : index
    %53 = vector.load %arg7[%c0_27, %c0_28, %c0_29] : memref<1x4x256xf32, #tpu.memory_space<vmem>>, vector<1x4x256xf32>
    %54 = vector.shape_cast %53 : vector<1x4x256xf32> to vector<4x256xf32>
    %55 = vector.shape_cast %52 : vector<4x256xf32> to vector<1x4x256xf32>
    tpu.vector_store %arg7[%c0_27, %c0_28, %c0_29], %55 {strides = array<i32>} : memref<1x4x256xf32, #tpu.memory_space<vmem>>, vector<1x4x256xf32>,
    return
  }
  func.func @transform_0(%arg0: i32, %arg1: i32) -> (i32, i32, i32) {
    %c0_i32 = arith.constant 0 : i32
    %c0_i32_0 = arith.constant 0 : i32
    return %arg0, %c0_i32, %arg1 : i32, i32, i32
  }
  func.func @transform_1(%arg0: i32, %arg1: i32) -> (i32, i32) {
    %c0_i32 = arith.constant 0 : i32
    %c0_i32_0 = arith.constant 0 : i32
    %c0_i32_1 = arith.constant 0 : i32
    return %c0_i32, %c0_i32_0 : i32, i32
  }
  func.func @transform_2(%arg0: i32, %arg1: i32) -> (i32, i32) {
    %c0_i32 = arith.constant 0 : i32
    %c0_i32_0 = arith.constant 0 : i32
    %c0_i32_1 = arith.constant 0 : i32
    return %c0_i32, %c0_i32_0 : i32, i32
  }
  func.func @transform_3(%arg0: i32, %arg1: i32) -> (i32, i32) {
    %c0_i32 = arith.constant 0 : i32
    %c0_i32_0 = arith.constant 0 : i32
    %c0_i32_1 = arith.constant 0 : i32
    return %c0_i32, %c0_i32_0 : i32, i32
  }
  func.func @transform_4(%arg0: i32, %arg1: i32) -> (i32, i32) {
    %c0_i32 = arith.constant 0 : i32
    %c0_i32_0 = arith.constant 0 : i32
    %c0_i32_1 = arith.constant 0 : i32
    return %c0_i32, %c0_i32_0 : i32, i32
  }
  func.func @transform_5(%arg0: i32, %arg1: i32) -> (i32, i32, i32) {
    %c0_i32 = arith.constant 0 : i32
    %c0_i32_0 = arith.constant 0 : i32
    return %arg0, %c0_i32, %arg1 : i32, i32, i32
  }
}

</mosaic_0001>

<bundles_post_ra>
// kernel: tpu_custom_call.1
= control target key start
LH: loop header
LB: loop body
LE: loop exit
PB: predicated region body
PF: predicated region fallthrough
CT: control target
= control target key end

     0   :  { %10 = vsyncpa [#allocation3], 0  ;;  %s1282_s0 = inlined_call_operand.vmem [shape: f32[2,4,256], index: 0, kind: input, shape index: {}]   ;;  %s1283_s1 = inlined_call_operand.vmem [shape: f32[32,4], index: 1, kind: input, shape index: {}]   ;;  %s1284_s2 = inlined_call_operand.vmem [shape: f32[32,1], index: 2, kind: input, shape index: {}]   ;;  %s1285_s3 = inlined_call_operand.vmem [shape: f32[4,32], index: 3, kind: input, shape index: {}]   ;;  %s1286_s4 = inlined_call_operand.vmem [shape: f32[4,1], index: 4, kind: input, shape index: {}]   ;;  %s1287_s5 = inlined_call_operand.hbm [shape: f32[2,4,256], index: 5, kind: output, shape index: {}]  }
   0x1   :  { %12 = vsyncpa [#allocation3 + $0x1], 0  ;;  %s1015_s18 = smov 0   ;;  %s1017_s19 = smov 0  }
   0x2   :  { %s1019_s20 = smov 0   ;;  %s1021_s21 = smov 0  }
   0x3   :  { %s1023_s22 = smov 0   ;;  %s1025_s23 = smov 0  }
   0x4 LB: > { %s788_s24 = sadd.s32 4294967295, %s979_s23   ;;  %s789_s25 = sadd.s32 4294967294, %s979_s23   ;;  %s979_s23 = sphi %s1025_s23, %s18_s23   ;;  %s975_s22 = sphi %s1023_s22, %s1294_s22   ;;  %s971_s21 = sphi %s1021_s21, %s1293_s21   ;;  %s967_s20 = sphi %s1019_s20, %s1292_s20   ;;  %s963_s19 = sphi %s1017_s19, %s1291_s19   ;;  %s959_s18 = sphi %s1015_s18, %s1290_s18  }
   0x5   : > { %s30_s26 = sadd.s32 1, %s975_s22  ;;  %s151_s27 = sadd.s32 1, %s967_s20 }
   0x6   : > { %p32_p0 = scmp.ge.s32.totalorder %s30_s26, 2  ;;  %p161_p1 = scmp.ne.s32.totalorder %s967_s20, %s963_s19 }
   0x7   : > { %p162_p2 = scmp.eq.s32.totalorder %s788_s24, 1  ;;  %p167_p3 = scmp.ne.s32.totalorder %s963_s19, %s959_s18 }
   0x8   : > { %s1296_s26 = smov (%p32_p0, %s30_s26), 0  ;;  %p168_p5 = scmp.eq.s32.totalorder %s789_s25, 1 }
   0x9   : > { %p1055_p4 = por %p162_p2, %p161_p1  ;;  %s146_s29 = ssub.s32 %s975_s22, %s1296_s26 }
   0xa   : > { %p792_p6 = scmp.ge.s32.totalorder %s979_s23, 1  ;;  %p149_p7 = scmp.eq.s32.totalorder %s146_s29, 0 }
   0xb   : > { %p1062_p8 = por %p168_p5, %p167_p3  ;;  %p211_p9 = scmp.lt.s32.totalorder %s979_s23, 3 }
   0xc   : > { %s1068_s6 = scalar_select %p149_p7, %s967_s20, %s151_s27  }
   0xd   : > { %p212_p10 = pnand %p792_p6, %p211_p9 }
   0xe   : > { %p244_p11 = scmp.lt.s32.totalorder (!%p212_p10), %s971_s21, 1  ;;  %s240_s17 = sand.u32 (!%p212_p10), 1, %s963_s19  }
   0xf   : > { %215 = sbr.rel (%p212_p10) target bundleno = 509 (0x1fd), region = 40  ;;  %s793_s24 = sshll.u32 (!%p212_p10), %s240_s17, 3 }
  0x10   : > { %s242_s27 = scalar_lea.vmem (!%p212_p10), [#allocation2], %s793_s24  ;;  %s696_s10 = scalar_lea.sflag (!%p212_p10), [#allocation3], %s240_s17 }
  0x11   : > { %s712_s29 = sshll.u32 (!%p212_p10), %s242_s27, 4  ;;  %s713_s29 = int_to_ptr.vmem [resolvable:$true] %s712_s29 }
  0x12   : > { %s903_s11 = scalar_lea.vmem (!%p212_p10), %s713_s29, 128 }
  0x13   : > { %p904_p12 = scmp.ne.s32.totalorder (!%p212_p10), %s713_s29, %s903_s11 }
  0x14   : > { %v981_v0 = vmov 0.0   ;;  %v260_v1 = vld [vmem:[%s1284_s2 + $0x8] sm:$0xff]  ;;  %s245_s9 = scalar_select %p244_p11, %s971_s21, 1  ;;  %v982_v2 = vmov 0   ;;  %v262_v3 = vld [vmem:[%s1284_s2 + $0x18] sm:$0xff]  ;;  %v259_v4 = vld [vmem:[%s1284_s2] sm:$0xff] }
  0x15   : > { %369 = vmatprep.mubr.f32.mxu0 %v981_v0  ;;  %683 = vmatprep.mubr.f32.mxu1 %v981_v0  ;;  %v261_v5 = vld [vmem:[%s1284_s2 + $0x10] sm:$0xff]  ;;  %vm300_vm0 = vcmask 1043456   ;;  %v255_v8 = vld [vmem:[%s1283_s1] sm:$0xff]  ;;  %vm287_vm1 = vcmask 31744   ;;  %v256_v10 = vld [vmem:[%s1283_s1 + $0x8] sm:$0xff]  ;;  %vm615_vm10 = vcmask 261120   ;;  %p905_p13 = pnand %p904_p12, %p1055_p4 }
  0x16   : > { %869 = vset.pattern.permute.xlu1 %v982_v2  ;;  %868 = vset.pattern.permute.xlu0 %v982_v2  ;;  %s808_s12 = sshll.u32 %s245_s9, 3  ;;  %v264_v9 = vld [vmem:[%s1286_s4] sm:$0xf]  ;;  %v257_v11 = vld [vmem:[%s1283_s1 + $0x10] sm:$0xff]  ;;  %v258_v12 = vld [vmem:[%s1283_s1 + $0x18] sm:$0xff] }
  0x17   : > { %272 = vperm.xlu1 %869, %v260_v1   ;;  %282 = vperm.xlu0 %868, %v262_v3   ;;  %s251_s25 = scalar_lea.vmem %s1282_s0, %s808_s12  ;;  %p906_p0 = pneg %p905_p13 }
  0x18   : > { %v254_v6 = vld [vmem:[%s251_s25] sm:$0xff]  ;;  %s809_s25 = sshll.u32 %s971_s21, 7  ;;  %s984_s12 = smov [#allocation2]  }
  0x19   : > { %v286_v7 = vcombine.high %v254_v6, %v254_v6  ;;  %s710_s9 = scalar_lea.hbm %s1287_s5, %s809_s25  ;;  %s907_s13 = sshll.u32 %s984_s12, 4  ;;  %s908_s13 = int_to_ptr.vmem [resolvable:$false] %s907_s13 }
  0x1a   : > { %s909_s21 = scalar_lea.vmem %s908_s13, 256  ;;  %p910_p1 = scmp.lt.s32.totalorder %s713_s29, %s908_s13 }
  0x1b   : > { %267 = vperm.xlu1 %869, %v259_v4   ;;  %277 = vperm.xlu0 %868, %v261_v5   ;;  %p911_p2 = scmp.lt.s32.totalorder %s909_s21, %s903_s11 }
  0x1c   : > { %796 = vmatprep.subr.msk.mxu0 %vm300_vm0, %v286_v7 }
  0x1d   : > { %797 = vmatpush1.msk.msra.mxu0 %vm300_vm0, %v254_v6  ;;  %p912_p3 = por %p911_p2, %p910_p1 }
  0x1e   : > { %798 = vmatmul.mubr.msk.f32.vlgmr.msra.gmra.mxu0 %vm287_vm1, %v255_v8 }
  0x1f   : > { %612 = vperm.xlu0 %868, %v264_v9   ;;  %375 = vmatprep.mubr.f32.mxu0 %v981_v0  ;;  %p913_p5 = pnand %p912_p3, %p906_p0 }
  0x22   : > { %799 = vmatmul.mubr.msk.f32.gmra.mxu0 %vm287_vm1, %v256_v10 }
  0x23   : > { %381 = vmatprep.mubr.f32.mxu0 %v981_v0 }
  0x26   : > { %800 = vmatmul.mubr.msk.f32.gmra.mxu0 %vm287_vm1, %v257_v11 }
  0x27   : > { %387 = vmatprep.mubr.f32.mxu0 %v981_v0 }
  0x2a   : > { %801 = vmatmul.mubr.msk.f32.gmra.mxu0 %vm287_vm1, %v258_v12 }
  0x92   : > { %v273_v13 = vpop.permute.xlu1 %272  ;;  %v283_v23 = vpop.permute.xlu0 %282 }
  0x96   : > { %v268_v14 = vpop.permute.xlu1 %267  ;;  %v278_v37 = vpop.permute.xlu0 %277 }
  0xde   : > { %v371_v15 = vpop.f32.mrf.mxu0 }
  0xdf   : > { %v1102_v16 = vadd.f32 %v371_v15, %v268_v14 }
  0xe0   : > { %v373_v17 = vpop.f32.mrf.mxu0 }
  0xe1   : > { %v1105_v18 = vmul.f32 0.70710677, %v1102_v16  ;;  %v1107_v19 = vadd.f32 %v373_v17, %v268_v14 }
  0xe2   : > { %v377_v20 = vpop.f32.mrf.mxu0 }
  0xe3   : > { %v1110_v21 = vand.u32 2147483647, %v1105_v18  ;;  %v1113_v22 = vmul.f32 0.70710677, %v1107_v19  ;;  %v1115_v24 = vadd.f32 %v377_v20, %v273_v13  ;;  %vm410_vm2 = vcmp.ge.f32.partialorder %v1105_v18, 0.0 }
  0xe4   : > { %v379_v25 = vpop.f32.mrf.mxu0 }
  0xe5   : > { %v434_v26 = vmul.f32 0.3275911, %v1110_v21  ;;  %v1119_v27 = vand.u32 2147483647, %v1113_v22  ;;  %v1122_v28 = vmul.f32 0.70710677, %v1115_v24  ;;  %v1124_v29 = vadd.f32 %v379_v25, %v273_v13 }
  0xe6   : > { %v383_v30 = vpop.f32.mrf.mxu0  ;;  %v538_v10 = vsub.f32 0.0, %v1110_v21  ;;  %vm411_vm3 = vcmp.ge.f32.partialorder %v1113_v22, 0.0 }
  0xe7   : > { %v442_v31 = vadd.f32 1.0, %v434_v26  ;;  %v435_v32 = vmul.f32 0.3275911, %v1119_v27  ;;  %v428_v33 = vand.u32 2147483647, %v1122_v28  ;;  %v1132_v41 = vadd.f32 %v383_v30, %v278_v37 }
  0xe8   : > { %v1129_v34 = vmul.f32 0.70710677, %v1124_v29  ;;  %v385_v35 = vpop.f32.mrf.mxu0  ;;  %v546_v30 = vmul.f32 %v538_v10, %v1110_v21  ;;  %vm412_vm9 = vcmp.ge.f32.partialorder %v1122_v28, 0.0 }
  0xe9   : > { %v443_v36 = vadd.f32 1.0, %v435_v32  ;;  %871 = vrcp.f32 %v442_v31  ;;  %v436_v38 = vmul.f32 0.3275911, %v428_v33  ;;  %v1134_v44 = vadd.f32 %v385_v35, %v278_v37 }
  0xea   : > { %v429_v39 = vand.u32 2147483647, %v1129_v34  ;;  %v389_v42 = vpop.f32.mrf.mxu0  ;;  %v1137_v45 = vmul.f32 0.70710677, %v1132_v41  ;;  %v540_v2 = vsub.f32 0.0, %v428_v33  ;;  %vm413_vm4 = vcmp.ge.f32.partialorder %v1129_v34, 0.0 }
  0xeb   : > { %873 = vrcp.f32 %v443_v36  ;;  %v444_v40 = vadd.f32 1.0, %v436_v38  ;;  %v1140_v47 = vmul.f32 0.70710677, %v1134_v44  ;;  %v1143_v49 = vadd.f32 %v389_v42, %v283_v23 }
  0xec   : > { %v437_v43 = vmul.f32 0.3275911, %v429_v39  ;;  %v430_v48 = vand.u32 2147483647, %v1137_v45  ;;  %v391_v50 = vpop.f32.mrf.mxu0  ;;  %v541_v6 = vsub.f32 0.0, %v429_v39  ;;  %v548_v13 = vmul.f32 %v540_v2, %v428_v33 }
  0xed   : > { %875 = vrcp.f32 %v444_v40  ;;  %v431_v52 = vand.u32 2147483647, %v1140_v47  ;;  %v1147_v53 = vmul.f32 0.70710677, %v1143_v49  ;;  %v1149_v54 = vadd.f32 %v391_v50, %v283_v23 }
  0xee   : > { %v445_v46 = vadd.f32 1.0, %v437_v43  ;;  %v438_v51 = vmul.f32 0.3275911, %v430_v48  ;;  %v542_v14 = vsub.f32 0.0, %v430_v48  ;;  %v549_v17 = vmul.f32 %v541_v6, %v429_v39 }
  0xef   : > { %v439_v56 = vmul.f32 0.3275911, %v431_v52  ;;  %v432_v57 = vand.u32 2147483647, %v1147_v53  ;;  %v1153_v58 = vmul.f32 0.70710677, %v1149_v54 }
  0xf0   : > { %877 = vrcp.f32 %v445_v46  ;;  %v446_v55 = vadd.f32 1.0, %v438_v51  ;;  %v543_v20 = vsub.f32 0.0, %v431_v52  ;;  %v539_v36 = vsub.f32 0.0, %v1119_v27 }
  0xf1   : > { %v447_v59 = vadd.f32 1.0, %v439_v56  ;;  %v440_v61 = vmul.f32 0.3275911, %v432_v57  ;;  %v433_v62 = vand.u32 2147483647, %v1153_v58  ;;  %v544_v31 = vsub.f32 0.0, %v432_v57 }
  0xf2   : > { %879 = vrcp.f32 %v446_v55  ;;  %v558_v33 = vmul.f32 1.442695, %v548_v13  ;;  %v550_v37 = vmul.f32 %v542_v14, %v430_v48  ;;  %v560_v39 = vmul.f32 1.442695, %v549_v17 }
  0xf3   : > { %881 = vrcp.f32 %v447_v59  ;;  %v448_v0 = vadd.f32 1.0, %v440_v61  ;;  %v441_v1 = vmul.f32 0.3275911, %v433_v62  ;;  %v551_v40 = vmul.f32 %v543_v20, %v431_v52 }
  0xf4   : > { %v545_v46 = vsub.f32 0.0, %v433_v62  ;;  %v554_v21 = vmul.f32 1.442695, %v546_v30  ;;  %v552_v55 = vmul.f32 %v544_v31, %v432_v57  ;;  %v562_v48 = vmul.f32 1.442695, %v550_v37 }
  0xf5   : > { %883 = vrcp.f32 %v448_v0  ;;  %v449_v7 = vadd.f32 1.0, %v441_v1  ;;  %v547_v0 = vmul.f32 %v539_v36, %v1119_v27  ;;  %v564_v2 = vmul.f32 1.442695, %v551_v40 }
  0xf6   : > { %v1155_v60 = vpop.eup %871  ;;  %v553_v57 = vmul.f32 %v545_v46, %v433_v62  ;;  %vm416_vm5 = vcmp.ge.f32.partialorder %v1147_v53, 0.0  ;;  %vm415_vm6 = vcmp.ge.f32.partialorder %v1140_v47, 0.0  ;;  %vm414_vm7 = vcmp.ge.f32.partialorder %v1137_v45, 0.0 }
  0xf7   : > { %v466_v4 = vmul.f32 1.0614054, %v1155_v60  ;;  %885 = vrcp.f32 %v449_v7  ;;  %v556_v13 = vmul.f32 1.442695, %v547_v0  ;;  %vm417_vm8 = vcmp.ge.f32.partialorder %v1153_v58, 0.0 }
  0xf8   : > { %v1158_v63 = vpop.eup %873  ;;  %887 = vpow2.f32 %v558_v33  ;;  %v398_v18 = vmul.f32 0.5, %v1132_v41 }
  0xf9   : > { %v467_v3 = vmul.f32 1.0614054, %v1158_v63  ;;  %v474_v11 = vadd.f32 -1.4531521, %v466_v4  ;;  %889 = vpow2.f32 %v560_v39 }
  0xfa   : > { %v1162_v5 = vpop.eup %875  ;;  %891 = vpow2.f32 %v562_v48 }
  0xfb   : > { %v468_v8 = vmul.f32 1.0614054, %v1162_v5  ;;  %v475_v9 = vadd.f32 -1.4531521, %v467_v3  ;;  %v482_v35 = vmul.f32 %v1155_v60, %v474_v11  ;;  %893 = vpow2.f32 %v564_v2 }
  0xfd   : > { %v1166_v12 = vpop.eup %877  ;;  %v476_v15 = vadd.f32 -1.4531521, %v468_v8  ;;  %v483_v26 = vmul.f32 %v1158_v63, %v475_v9  ;;  %v490_v59 = vadd.f32 1.4214138, %v482_v35  ;;  %v566_v9 = vmul.f32 1.442695, %v552_v55 }
  0xfe   : > { %v469_v23 = vmul.f32 1.0614054, %v1166_v12 }
  0xff   : > { %v484_v25 = vmul.f32 %v1162_v5, %v476_v15  ;;  %v1174_v38 = vpop.eup %879  ;;  %v491_v51 = vadd.f32 1.4214138, %v483_v26  ;;  %v498_v11 = vmul.f32 %v1155_v60, %v490_v59  ;;  %895 = vpow2.f32 %v566_v9 }
 0x100   : > { %v477_v32 = vadd.f32 -1.4531521, %v469_v23  ;;  %v470_v50 = vmul.f32 1.0614054, %v1174_v38  ;;  %v1178_v61 = vpop.eup %881  ;;  %897 = vpow2.f32 %v556_v13 }
 0x101   : > { %v492_v43 = vadd.f32 1.4214138, %v484_v25  ;;  %v471_v52 = vmul.f32 1.0614054, %v1178_v61  ;;  %v499_v8 = vmul.f32 %v1158_v63, %v491_v51  ;;  %v568_v25 = vmul.f32 1.442695, %v553_v57 }
 0x102   : > { %v485_v42 = vmul.f32 %v1166_v12, %v477_v32  ;;  %v478_v1 = vadd.f32 -1.4531521, %v470_v50  ;;  %v1184_v6 = vpop.eup %883  ;;  %v506_v36 = vadd.f32 -0.28449672, %v498_v11  ;;  %899 = vpow2.f32 %v554_v21 }
 0x103   : > { %v500_v4 = vmul.f32 %v1162_v5, %v492_v43  ;;  %v472_v27 = vmul.f32 1.0614054, %v1184_v6  ;;  %v479_v10 = vadd.f32 -1.4531521, %v471_v52  ;;  %v507_v31 = vadd.f32 -0.28449672, %v499_v8 }
 0x104   : > { %v493_v56 = vadd.f32 1.4214138, %v485_v42  ;;  %v486_v7 = vmul.f32 %v1174_v38, %v478_v1  ;;  %v1190_v17 = vpop.eup %885  ;;  %901 = vpow2.f32 %v568_v25  ;;  %v514_v59 = vmul.f32 %v1155_v60, %v506_v36 }
 0x105   : > { %v480_v20 = vadd.f32 -1.4531521, %v472_v27  ;;  %v487_v62 = vmul.f32 %v1178_v61, %v479_v10  ;;  %v508_v23 = vadd.f32 -0.28449672, %v500_v4  ;;  %v473_v26 = vmul.f32 1.0614054, %v1190_v17  ;;  %v888_v1 = vpop.eup %887 }
 0x106   : > { %v501_v3 = vmul.f32 %v1166_v12, %v493_v56  ;;  %v494_v14 = vadd.f32 1.4214138, %v486_v7  ;;  %v515_v51 = vmul.f32 %v1158_v63, %v507_v31  ;;  %v890_v7 = vpop.eup %889  ;;  %v522_v10 = vadd.f32 0.2548296, %v514_v59 }
 0x107   : > { %v488_v32 = vmul.f32 %v1184_v6, %v480_v20  ;;  %v495_v35 = vadd.f32 1.4214138, %v487_v62  ;;  %v481_v33 = vadd.f32 -1.4531521, %v473_v26  ;;  %v516_v43 = vmul.f32 %v1162_v5, %v508_v23 }
 0x108   : > { %v509_v15 = vadd.f32 -0.28449672, %v501_v3  ;;  %v502_v30 = vmul.f32 %v1174_v38, %v494_v14  ;;  %v523_v57 = vadd.f32 0.2548296, %v515_v51  ;;  %v892_v14 = vpop.eup %891 }
 0x109   : > { %v496_v40 = vadd.f32 1.4214138, %v488_v32  ;;  %v503_v42 = vmul.f32 %v1178_v61, %v495_v35  ;;  %v489_v46 = vmul.f32 %v1190_v17, %v481_v33  ;;  %v524_v3 = vadd.f32 0.2548296, %v516_v43  ;;  %v894_v23 = vpop.eup %893 }
 0x10a   : > { %v510_v37 = vadd.f32 -0.28449672, %v502_v30  ;;  %v517_v39 = vmul.f32 %v1166_v12, %v509_v15  ;;  %v531_v26 = vmul.f32 %v1158_v63, %v523_v57 }
 0x10b   : > { %v504_v55 = vmul.f32 %v1184_v6, %v496_v40  ;;  %v511_v56 = vadd.f32 -0.28449672, %v503_v42  ;;  %v497_v0 = vadd.f32 1.4214138, %v489_v46  ;;  %v532_v62 = vmul.f32 %v1162_v5, %v524_v3 }
 0x10c   : > { %v518_v50 = vmul.f32 %v1174_v38, %v510_v37  ;;  %v525_v21 = vadd.f32 0.2548296, %v517_v39  ;;  %v896_v35 = vpop.eup %895 }
 0x10d   : > { %v512_v2 = vadd.f32 -0.28449672, %v504_v55  ;;  %v519_v52 = vmul.f32 %v1178_v61, %v511_v56  ;;  %v505_v4 = vmul.f32 %v1190_v17, %v497_v0  ;;  %v898_v36 = vpop.eup %897  ;;  %v572_v63 = vmul.f32 %v888_v1, %v532_v62 }
 0x10e   : > { %v526_v48 = vadd.f32 0.2548296, %v518_v50  ;;  %v533_v13 = vmul.f32 %v1166_v12, %v525_v21  ;;  %v571_v37 = vmul.f32 %v898_v36, %v531_v26  ;;  %v983_v50 = vmov -1.0  }
 0x10f   : > { %v520_v8 = vmul.f32 %v1184_v6, %v512_v2  ;;  %v527_v9 = vadd.f32 0.2548296, %v519_v52  ;;  %v513_v11 = vadd.f32 -0.28449672, %v505_v4  ;;  %v900_v33 = vpop.eup %899  ;;  %v424_v51 = vsel %vm416_vm5, 1.0, %v983_v50 }
 0x110   : > { %v534_v27 = vmul.f32 %v1174_v38, %v526_v48  ;;  %v530_v38 = vmul.f32 %v1155_v60, %v522_v10  ;;  %v423_v47 = vsel %vm415_vm6, 1.0, %v983_v50  ;;  %v580_v56 = vsub.f32 1.0, %v572_v63 }
 0x111   : > { %v528_v15 = vadd.f32 0.2548296, %v520_v8  ;;  %v535_v20 = vmul.f32 %v1178_v61, %v527_v9  ;;  %v521_v25 = vmul.f32 %v1190_v17, %v513_v11  ;;  %v573_v61 = vmul.f32 %v890_v7, %v533_v13  ;;  %v902_v39 = vpop.eup %901 }
 0x112   : > { %v574_v32 = vmul.f32 %v892_v14, %v534_v27  ;;  %v570_v43 = vmul.f32 %v900_v33, %v530_v38  ;;  %v422_v59 = vsel %vm414_vm7, 1.0, %v983_v50  ;;  %v579_v45 = vsub.f32 1.0, %v571_v37 }
 0x113   : > { %v536_v30 = vmul.f32 %v1184_v6, %v528_v15  ;;  %v575_v31 = vmul.f32 %v894_v23, %v535_v20  ;;  %v529_v12 = vadd.f32 0.2548296, %v521_v25  ;;  %v581_v55 = vsub.f32 1.0, %v573_v61 }
 0x114   : > { %v582_v42 = vsub.f32 1.0, %v574_v32  ;;  %v421_v21 = vsel %vm413_vm4, 1.0, %v983_v50  ;;  %v425_v1 = vsel %vm417_vm8, 1.0, %v983_v50  ;;  %v578_v2 = vsub.f32 1.0, %v570_v43 }
 0x115   : > { %v576_v5 = vmul.f32 %v896_v35, %v536_v30  ;;  %v537_v6 = vmul.f32 %v1190_v17, %v529_v12  ;;  %v583_v60 = vsub.f32 1.0, %v575_v31  ;;  %v420_v52 = vsel %vm412_vm9, 1.0, %v983_v50 }
 0x116   : > { %v590_v58 = vmul.f32 %v582_v42, %v422_v59  ;;  %v589_v53 = vmul.f32 %v581_v55, %v421_v21  ;;  %v418_v4 = vsel %vm410_vm2, 1.0, %v983_v50  ;;  %v419_v28 = vsel %vm411_vm3, 1.0, %v983_v50 }
 0x117   : > { %v584_v40 = vsub.f32 1.0, %v576_v5  ;;  %v577_v46 = vmul.f32 %v902_v39, %v537_v6  ;;  %v591_v48 = vmul.f32 %v583_v60, %v423_v47  ;;  %v588_v7 = vmul.f32 %v580_v56, %v420_v52 }
 0x118   : > { %v401_v8 = vmul.f32 0.5, %v1149_v54  ;;  %v587_v34 = vmul.f32 %v579_v45, %v419_v28  ;;  %v400_v10 = vmul.f32 0.5, %v1143_v49  ;;  %v598_v11 = vadd.f32 1.0, %v590_v58 }
 0x119   : > { %v592_v17 = vmul.f32 %v584_v40, %v424_v51  ;;  %v585_v0 = vsub.f32 1.0, %v577_v46  ;;  %v599_v27 = vadd.f32 1.0, %v591_v48  ;;  %v586_v13 = vmul.f32 %v578_v2, %v418_v4 }
 0x11a   : > { %v399_v14 = vmul.f32 0.5, %v1134_v44  ;;  %v597_v20 = vadd.f32 1.0, %v589_v53  ;;  %v596_v22 = vadd.f32 1.0, %v588_v7  ;;  %v397_v23 = vmul.f32 0.5, %v1124_v29 }
 0x11b   : > { %v593_v3 = vmul.f32 %v585_v0, %v425_v1  ;;  %v600_v57 = vadd.f32 1.0, %v592_v17  ;;  %v595_v54 = vadd.f32 1.0, %v587_v34  ;;  %v396_v26 = vmul.f32 0.5, %v1115_v24  ;;  %v263_v24 = vld [vmem:[%s1285_s3] sm:$0xf] }
 0x11c   : > { %v607_v25 = vmul.f32 %v599_v27, %v399_v14  ;;  %v606_v30 = vmul.f32 %v598_v11, %v398_v18  ;;  %v594_v49 = vadd.f32 1.0, %v586_v13  ;;  %v395_v31 = vmul.f32 0.5, %v1107_v19 }
 0x11d   : > { %v601_v9 = vadd.f32 1.0, %v593_v3  ;;  %v608_v62 = vmul.f32 %v600_v57, %v400_v10  ;;  %v605_v44 = vmul.f32 %v597_v20, %v397_v23  ;;  %v394_v32 = vmul.f32 0.5, %v1102_v16  ;;  %v613_v16 = vpop.permute.xlu0 %612 }
 0x11e   : > { %v604_v41 = vmul.f32 %v596_v22, %v396_v26  ;;  %v603_v29 = vmul.f32 %v595_v54, %v395_v31 }
 0x11f   : > { %v609_v15 = vmul.f32 %v601_v9, %v401_v8  ;;  %v602_v38 = vmul.f32 %v594_v49, %v394_v32 }
 0x121   : > { %643 = vmatprep.subr.mxu1 %v609_v15 }
 0x122   : > { %644 = vmatpush1.msra.mxu1 %v608_v62 }
 0x123   : > { %645 = vmatprep.subr.mxu1 %v607_v25 }
 0x124   : > { %646 = vmatpush1.msra.mxu1 %v606_v30 }
 0x125   : > { %647 = vmatprep.subr.mxu1 %v605_v44 }
 0x126   : > { %648 = vmatpush1.msra.mxu1 %v604_v41 }
 0x127   : > { %649 = vmatprep.subr.mxu1 %v603_v29 }
 0x128   : > { %650 = vmatpush1.msra.mxu1 %v602_v38 }
 0x129   : > { %802 = vmatmul.mubr.msk.f32.vlgmr.msra.gmra.mxu1 %vm615_vm10, %v263_v24 }
 0x1e9   : > { %v685_v19 = vpop.f32.mrf.mxu1 }
 0x1ea   : > { %v686_v12 = vadd.f32 %v685_v19, %v613_v16 }
 0x1eb   : > { %v687_v35 = vpop.f32.mrf.mxu1 }
 0x1ec   : > { %v688_v61 = vadd.f32 %v687_v35, %v613_v16 }
 0x1ee   : > { %v692_v36 = vcombine.low %v686_v12, %v688_v61 }
 0x1f0   : > { %694 = vst [vmem:[%s242_s27] sm:$0xff] %v692_v36 }
 0x1f1   : > { %916 = shalt.err (!%p913_p5)
}
 0x1f2   : > { %s917_s14 = scalar_lea.hbm %s710_s9, 128  ;;  %s921_s17 = scalar_lea.hbm %s1287_s5, 256 }
 0x1f3   : > { %p918_p6 = scmp.ne.s32.totalorder %s710_s9, %s917_s14  ;;  %p922_p10 = scmp.lt.s32.totalorder %s710_s9, %s1287_s5 }
 0x1f4   : > { %p923_p11 = scmp.lt.s32.totalorder %s921_s17, %s917_s14 }
 0x1f5   : > { %p919_p7 = pnand %p918_p6, %p1055_p4 }
 0x1f6   : > { %p924_p12 = por %p923_p11, %p922_p10 }
 0x1f7   : > { %p920_p9 = pneg %p919_p7 }
 0x1f9   : > { %p925_p13 = pnand %p924_p12, %p920_p9 }
 0x1fb   : > { %928 = shalt.err (!%p925_p13)
}
 0x1fc   : > { %810 = dma.vmem_to_hbm [thread:$0]  (%p1055_p4), %s713_s29, 128, %s710_s9, %s696_s10  }
 0x1fd PF: > { %p816_p0 = scmp.ge.s32.totalorder %s979_s23, 2  ;;  %s724_s27 = sand.u32 1, %s959_s18  }
 0x1fe   : > { %s725_s7 = scalar_lea.sflag [#allocation3], %s724_s27 }
 0x1ff   : > { %p813_p1 = pnand %p816_p0, %p1062_p8 }
 0x201   : > { %p814_p2 = pneg %p813_p1 }
 0x203   : > { %954 = dma.done.wait (%p814_p2), %s725_s7, 128  }
 0x204   : > { %956 = vsyncadd (%p814_p2), %s725_s7, 4294967168  ;;  %s18_s23 = sadd.s32 1, %s979_s23   ;;  %s1290_s18 = smov %s963_s19 }
 0x205   : > { %p15_p3 = scmp.ge.s32.totalorder %s18_s23, 4   ;;  %s1291_s19 = smov %s967_s20 }
 0x206   : > { %s1292_s20 = smov %s1068_s6  ;;  %s1293_s21 = smov %s975_s22 }
 0x207   : > { %s1294_s22 = smov %s1296_s26  ;;  %17 = sbr.rel (!%p15_p3) target bundleno = 4 (0x4), region = 75 }
 0x20c   :  { %730 = vsyncpa [#allocation3], 1 }
 0x20d   :  { %732 = vsyncpa [#allocation3 + $0x1], 1 }

</bundles_post_ra>
